<compile_context>
chip_gen: v5e
topology: v5e:2x2
jax: 0.10.0
libtpu: 0.0.40
codegen_flags: <defaults>
</compile_context>

<pallas_src>
import functools

import jax
import jax.numpy as jnp
from jax.experimental import pallas as pl
from jax.experimental.pallas import tpu as pltpu


_LANE = 128      # lane width: final output dim padded to a multiple of this
_SUBLANE = 8     # fp32 sublane granule: batch rows / contraction dims padded to this


def _round_up(n, m):
    return ((n + m - 1) // m) * m


def _pick_tn(n_pad):
    """Largest tile in {2048..128} dividing the (128-aligned) padded output dim."""
    for cand in (2048, 1024, 512, 256, 128):
        if n_pad % cand == 0:
            return cand
    return n_pad


# ---------------------------------------------------------------------------
# Fused Pallas kernel.  Grid = (N_pad // tn,) over output-N tiles.
# refs = (x, w1, b1, ..., wH, bH, w_out_tile, b_out_tile, out_tile)
# Hidden stack is tiny and recomputed per step (kept "parallel"-safe for v7x).
# ---------------------------------------------------------------------------

def _fused_decoder_kernel(n_hidden, *refs):
    x_ref = refs[0]
    hidden = refs[1:1 + 2 * n_hidden]
    w_out_ref = refs[1 + 2 * n_hidden]
    b_out_ref = refs[2 + 2 * n_hidden]
    out_ref = refs[3 + 2 * n_hidden]

    h = x_ref[...]                                            # (Bp, Din_p) fp32
    for i in range(n_hidden):
        w = hidden[2 * i][...]                                # (din_i, dout_i)
        b = hidden[2 * i + 1][...]                            # (1, dout_i)
        # hidden LinearLayer: relu( BN(x @ W + b) ) with BN folded into w/b.
        h = jnp.maximum(
            jnp.dot(h, w, preferred_element_type=jnp.float32) + b, 0.0)
    # output LinearLayer tile: no batchnorm, no activation.  Lane-dense store.
    out_ref[...] = (
        jnp.dot(h, w_out_ref[...], preferred_element_type=jnp.float32)
        + b_out_ref[...])


# ---------------------------------------------------------------------------
# Wrapper: one jit, one pallas_call, N-tiled output streaming.
# ---------------------------------------------------------------------------

def make_decoder_fn(n_hidden, output_dim):
    kernel = functools.partial(_fused_decoder_kernel, n_hidden)

    @jax.jit
    def forward(x, *flat_params):
        B, Din = x.shape
        Bp = _round_up(B, _SUBLANE)
        Din_p = flat_params[0].shape[0]
        K_last, N_pad = flat_params[-2].shape
        tn = _pick_tn(N_pad)
        grid = (N_pad // tn,)

        # Only pad x if the batch / input dims actually need it (no-op for the test).
        if (Bp, Din_p) != (B, Din):
            x = jnp.zeros((Bp, Din_p), x.dtype).at[:B, :Din].set(x)

        # Small operands: full-array blocks, constant index map -> loaded once,
        # resident in VMEM across all grid steps (no re-DMA).
        in_specs = [pl.BlockSpec((Bp, Din_p), lambda j: (0, 0))]
        for p in flat_params[:-2]:
            in_specs.append(pl.BlockSpec(p.shape, lambda j: (0, 0)))
        # Streamed output-layer weight / bias tiles (double-buffered by the pipeline).
        in_specs.append(pl.BlockSpec((K_last, tn), lambda j: (0, j)))
        in_specs.append(pl.BlockSpec((1, tn), lambda j: (0, j)))
        out_specs = pl.BlockSpec((Bp, tn), lambda j: (0, j))

        # Advisory cost estimate for XLA scheduling around the custom call.
        flops = 2 * Bp * K_last * N_pad
        bytes_accessed = x.size * 4 + Bp * N_pad * 4
        for i in range(n_hidden):
            w = flat_params[2 * i]
            b = flat_params[2 * i + 1]
            flops += 2 * Bp * w.shape[0] * w.shape[1] * (N_pad // tn)
            bytes_accessed += (w.size + b.size) * 4
        bytes_accessed += (flat_params[-2].size + flat_params[-1].size) * 4

        out_p = pl.pallas_call(
            kernel,
            out_shape=jax.ShapeDtypeStruct((Bp, N_pad), jnp.float32),
            grid=grid,
            in_specs=in_specs,
            out_specs=out_specs,
            compiler_params=pltpu.CompilerParams(
                # N tiles are independent -> "parallel" lets v7x split them over
                # both TensorCores (v5e/v6e single-TC: no effect).
                dimension_semantics=("parallel",)),
            cost_estimate=pl.CostEstimate(
                flops=flops, transcendentals=0, bytes_accessed=bytes_accessed),
        )(x, *flat_params)

        return out_p[:B, :output_dim]

    return forward


# ---------------------------------------------------------------------------
# Host-side parameter prep: fold eval-mode BN into W/b; pad contraction / interior
# dims only to the 8-row sublane granule, and the FINAL output dim to 128 lanes.
# ---------------------------------------------------------------------------

def fold_and_pad_params(params):
    flat = []
    for layer in params["hidden"]:
        w = layer["w"] * layer["s"]                # fold BN scale per output column
        b = layer["b"] * layer["s"] + layer["t"]   # fold BN shift into bias
        # (a LinearLayer `mask` would be folded here too:  w = w * mask)
        din, dout = w.shape
        din_p = _round_up(din, _SUBLANE)           # contraction rows: 8 only, NOT 128
        dout_p = _round_up(dout, _SUBLANE)         # interior width: 8 only (next K)
        wp = jnp.zeros((din_p, dout_p), w.dtype).at[:din, :dout].set(w)
        bp = jnp.zeros((1, dout_p), b.dtype).at[:, :dout].set(b)
        flat += [wp, bp]
    w = params["out"]["w"]
    b = params["out"]["b"]
    din, dout = w.shape
    din_p = _round_up(din, _SUBLANE)
    dout_p = _round_up(dout, _LANE)                # lane-dense store + N tiling
    wp = jnp.zeros((din_p, dout_p), w.dtype).at[:din, :dout].set(w)
    bp = jnp.zeros((1, dout_p), b.dtype).at[:, :dout].set(b)
    flat += [wp, bp]
    return tuple(flat)


def init_decoder_params(key, input_dim, hidden_dims, output_dim):
    """Deterministic synthetic parameters matching the module's __init__ shapes."""
    params = {"hidden": [], "out": None}
    dims = [input_dim] + list(hidden_dims)
    eps = 1e-5
    for i in range(len(hidden_dims)):
        din, dout = dims[i], dims[i + 1]
        key, kw, kb, kg, kbeta, km, kv = jax.random.split(key, 7)
        # nn.Linear weight is (out, in); we store the transpose (in, out).
        w = (jax.random.normal(kw, (dout, din), jnp.float32) / jnp.sqrt(din)).T
        b = jax.random.normal(kb, (1, dout), jnp.float32) * 0.1
        gamma = 1.0 + 0.1 * jax.random.normal(kg, (1, dout), jnp.float32)
        beta = 0.1 * jax.random.normal(kbeta, (1, dout), jnp.float32)
        run_mean = 0.1 * jax.random.normal(km, (1, dout), jnp.float32)
        run_var = jnp.abs(1.0 + 0.1 * jax.random.normal(kv, (1, dout), jnp.float32))
        s = gamma / jnp.sqrt(run_var + eps)          # folded BN scale
        t = beta - run_mean * s                      # folded BN shift
        params["hidden"].append(dict(w=w, b=b, s=s, t=t))
    din, dout = hidden_dims[-1], output_dim
    key, kw, kb = jax.random.split(key, 3)
    w_out = (jax.random.normal(kw, (dout, din), jnp.float32) / jnp.sqrt(din)).T
    b_out = jax.random.normal(kb, (1, dout), jnp.float32) * 0.1
    params["out"] = dict(w=w_out, b=b_out)
    return params


# Pure-JAX reference (un-folded, un-padded) to validate the kernel + host folding.
def _reference_forward(params, x):
    for layer in params["hidden"]:
        y = x @ layer["w"] + layer["b"]
        y = y * layer["s"] + layer["t"]
        x = jnp.maximum(y, 0.0)
    return x @ params["out"]["w"] + params["out"]["b"]


# ---------------------------------------------------------------------------
# Main
# ---------------------------------------------------------------------------

if __name__ == "__main__":
    batch = 8
    input_dim = 32          # latent dim fed to the decoder
    hidden_dims = [64, 48]
    output_dim = 40

    key = jax.random.PRNGKey(0)
    key, kx, kp = jax.random.split(key, 3)

    x = jax.random.normal(kx, (batch, input_dim), jnp.float32)
    params = init_decoder_params(kp, input_dim, hidden_dims, output_dim)
    flat_params = fold_and_pad_params(params)

    forward = make_decoder_fn(len(hidden_dims), output_dim)
    recon = jax.block_until_ready(forward(x, *flat_params))

    ref = _reference_forward(params, x)
    assert recon.shape == (batch, output_dim), recon.shape
    assert jnp.allclose(recon, ref, atol=1e-4, rtol=1e-4), "mismatch vs reference"

    print("KERNEL_OK")
</pallas_src>

<mosaic_0001>
module attributes {stable_mosaic.version = 11 : i64} {
  func.func @_fused_decoder_kernel(%arg0: i32, %arg1: memref<8x32xf32, #tpu.memory_space<vmem>>, %arg2: memref<32x64xf32, #tpu.memory_space<vmem>>, %arg3: memref<1x64xf32, #tpu.memory_space<vmem>>, %arg4: memref<64x48xf32, #tpu.memory_space<vmem>>, %arg5: memref<1x48xf32, #tpu.memory_space<vmem>>, %arg6: memref<48x128xf32, #tpu.memory_space<vmem>>, %arg7: memref<1x128xf32, #tpu.memory_space<vmem>>, %arg8: memref<8x128xf32, #tpu.memory_space<vmem>>) attributes {dimension_semantics = [#tpu.dimension_semantics<parallel>], iteration_bounds = array<i64: 1>, scalar_prefetch = 0 : i64, scratch_operands = 0 : i64, tpu.core_type = #tpu.core_type<tc>, window_params = [{pipeline_mode = #tpu.pipeline_mode<synchronous>, transform_indices = @transform_0, window_bounds = array<i64: 8, 32>}, {pipeline_mode = #tpu.pipeline_mode<synchronous>, transform_indices = @transform_1, window_bounds = array<i64: 32, 64>}, {pipeline_mode = #tpu.pipeline_mode<synchronous>, transform_indices = @transform_2, window_bounds = array<i64: 1, 64>}, {pipeline_mode = #tpu.pipeline_mode<synchronous>, transform_indices = @transform_3, window_bounds = array<i64: 64, 48>}, {pipeline_mode = #tpu.pipeline_mode<synchronous>, transform_indices = @transform_4, window_bounds = array<i64: 1, 48>}, {transform_indices = @transform_5, window_bounds = array<i64: 48, 128>}, {transform_indices = @transform_6, window_bounds = array<i64: 1, 128>}, {transform_indices = @transform_7, window_bounds = array<i64: 8, 128>}]} {
    %c0 = arith.constant 0 : index
    %c0_0 = arith.constant 0 : index
    %0 = vector.load %arg1[%c0, %c0_0] : memref<8x32xf32, #tpu.memory_space<vmem>>, vector<8x32xf32>
    %c0_1 = arith.constant 0 : index
    %c0_2 = arith.constant 0 : index
    %1 = vector.load %arg2[%c0_1, %c0_2] : memref<32x64xf32, #tpu.memory_space<vmem>>, vector<32x64xf32>
    %c0_3 = arith.constant 0 : index
    %c0_4 = arith.constant 0 : index
    %2 = vector.load %arg3[%c0_3, %c0_4] : memref<1x64xf32, #tpu.memory_space<vmem>>, vector<1x64xf32>
    %cst = arith.constant dense<0.000000e+00> : vector<8x64xf32>
    %3 = tpu.matmul %0, %1, %cst {dimension_numbers = #tpu.dot_dimension_numbers<[1], [0], [0], [1], [0, 0, 1, 1], [], []>} : vector<8x32xf32>, vector<32x64xf32>, vector<8x64xf32> -> vector<8x64xf32>
    %4 = vector.broadcast %2 : vector<1x64xf32> to vector<8x64xf32>
    %5 = arith.addf %3, %4 : vector<8x64xf32>
    %cst_5 = arith.constant 0.000000e+00 : f32
    %6 = vector.broadcast %cst_5 : f32 to vector<8x64xf32>
    %7 = arith.maximumf %5, %6 : vector<8x64xf32>
    %c0_6 = arith.constant 0 : index
    %c0_7 = arith.constant 0 : index
    %8 = vector.load %arg4[%c0_6, %c0_7] : memref<64x48xf32, #tpu.memory_space<vmem>>, vector<64x48xf32>
    %c0_8 = arith.constant 0 : index
    %c0_9 = arith.constant 0 : index
    %9 = vector.load %arg5[%c0_8, %c0_9] : memref<1x48xf32, #tpu.memory_space<vmem>>, vector<1x48xf32>
    %cst_10 = arith.constant dense<0.000000e+00> : vector<8x48xf32>
    %10 = tpu.matmul %7, %8, %cst_10 {dimension_numbers = #tpu.dot_dimension_numbers<[1], [0], [0], [1], [0, 0, 1, 1], [], []>} : vector<8x64xf32>, vector<64x48xf32>, vector<8x48xf32> -> vector<8x48xf32>
    %11 = vector.broadcast %9 : vector<1x48xf32> to vector<8x48xf32>
    %12 = arith.addf %10, %11 : vector<8x48xf32>
    %cst_11 = arith.constant 0.000000e+00 : f32
    %13 = vector.broadcast %cst_11 : f32 to vector<8x48xf32>
    %14 = arith.maximumf %12, %13 : vector<8x48xf32>
    %c0_12 = arith.constant 0 : index
    %c0_13 = arith.constant 0 : index
    %15 = vector.load %arg6[%c0_12, %c0_13] : memref<48x128xf32, #tpu.memory_space<vmem>>, vector<48x128xf32>
    %cst_14 = arith.constant dense<0.000000e+00> : vector<8x128xf32>
    %16 = tpu.matmul %14, %15, %cst_14 {dimension_numbers = #tpu.dot_dimension_numbers<[1], [0], [0], [1], [0, 0, 1, 1], [], []>} : vector<8x48xf32>, vector<48x128xf32>, vector<8x128xf32> -> vector<8x128xf32>
    %c0_15 = arith.constant 0 : index
    %c0_16 = arith.constant 0 : index
    %17 = vector.load %arg7[%c0_15, %c0_16] : memref<1x128xf32, #tpu.memory_space<vmem>>, vector<1x128xf32>
    %18 = vector.broadcast %17 : vector<1x128xf32> to vector<8x128xf32>
    %19 = arith.addf %16, %18 : vector<8x128xf32>
    %c0_17 = arith.constant 0 : index
    %c0_18 = arith.constant 0 : index
    %20 = vector.load %arg8[%c0_17, %c0_18] : memref<8x128xf32, #tpu.memory_space<vmem>>, vector<8x128xf32>
    tpu.vector_store %arg8[%c0_17, %c0_18], %19 {strides = array<i32>} : memref<8x128xf32, #tpu.memory_space<vmem>>, vector<8x128xf32>,
    return
  }
  func.func @transform_0(%arg0: i32) -> (i32, i32) {
    %c0_i32 = arith.constant 0 : i32
    %c0_i32_0 = arith.constant 0 : i32
    %c0_i32_1 = arith.constant 0 : i32
    return %c0_i32, %c0_i32_0 : i32, i32
  }
  func.func @transform_1(%arg0: i32) -> (i32, i32) {
    %c0_i32 = arith.constant 0 : i32
    %c0_i32_0 = arith.constant 0 : i32
    %c0_i32_1 = arith.constant 0 : i32
    return %c0_i32, %c0_i32_0 : i32, i32
  }
  func.func @transform_2(%arg0: i32) -> (i32, i32) {
    %c0_i32 = arith.constant 0 : i32
    %c0_i32_0 = arith.constant 0 : i32
    %c0_i32_1 = arith.constant 0 : i32
    return %c0_i32, %c0_i32_0 : i32, i32
  }
  func.func @transform_3(%arg0: i32) -> (i32, i32) {
    %c0_i32 = arith.constant 0 : i32
    %c0_i32_0 = arith.constant 0 : i32
    %c0_i32_1 = arith.constant 0 : i32
    return %c0_i32, %c0_i32_0 : i32, i32
  }
  func.func @transform_4(%arg0: i32) -> (i32, i32) {
    %c0_i32 = arith.constant 0 : i32
    %c0_i32_0 = arith.constant 0 : i32
    %c0_i32_1 = arith.constant 0 : i32
    return %c0_i32, %c0_i32_0 : i32, i32
  }
  func.func @transform_5(%arg0: i32) -> (i32, i32) {
    %c0_i32 = arith.constant 0 : i32
    %c0_i32_0 = arith.constant 0 : i32
    return %c0_i32, %arg0 : i32, i32
  }
  func.func @transform_6(%arg0: i32) -> (i32, i32) {
    %c0_i32 = arith.constant 0 : i32
    %c0_i32_0 = arith.constant 0 : i32
    return %c0_i32, %arg0 : i32, i32
  }
  func.func @transform_7(%arg0: i32) -> (i32, i32) {
    %c0_i32 = arith.constant 0 : i32
    %c0_i32_0 = arith.constant 0 : i32
    return %c0_i32, %arg0 : i32, i32
  }
}

</mosaic_0001>

<bundles_post_ra>
// kernel: forward.1
= control target key start
LH: loop header
LB: loop body
LE: loop exit
PB: predicated region body
PF: predicated region fallthrough
CT: control target
= control target key end

     0   :  { %s292_s0 = inlined_call_operand.vmem [shape: f32[8,32], index: 0, kind: input, shape index: {}]   ;;  %s293_s1 = inlined_call_operand.vmem [shape: f32[32,64], index: 1, kind: input, shape index: {}]   ;;  %s294_s2 = inlined_call_operand.vmem [shape: f32[1,64], index: 2, kind: input, shape index: {}]   ;;  %s295_s3 = inlined_call_operand.vmem [shape: f32[64,48], index: 3, kind: input, shape index: {}]   ;;  %s296_s4 = inlined_call_operand.vmem [shape: f32[1,48], index: 4, kind: input, shape index: {}]   ;;  %s297_s5 = inlined_call_operand.vmem [shape: f32[48,128], index: 5, kind: input, shape index: {}]   ;;  %s298_s6 = inlined_call_operand.vmem [shape: f32[1,128], index: 6, kind: input, shape index: {}]   ;;  %s299_s7 = inlined_call_operand.hbm [shape: f32[8,128], index: 7, kind: output, shape index: {}]  }
   0x1   :  { %v31_v0 = vld [vmem:[%s293_s1 + $0x18] sm:$0xff]  ;;  %v30_v1 = vld [vmem:[%s293_s1 + $0x10] sm:$0xff]  ;;  %v29_v3 = vld [vmem:[%s293_s1 + $0x8] sm:$0xff] }
   0x2   :  { %52 = vmatpush.msra.mxu0 %v31_v0  ;;  %v68_v2 = vld [vmem:[%s295_s3 + $0x38] sm:$0xff]  ;;  %v67_v4 = vld [vmem:[%s295_s3 + $0x30] sm:$0xff]  ;;  %v28_v5 = vld [vmem:[%s293_s1] sm:$0xff] }
   0x3   :  { %85 = vmatpush.msra.mxu1 %v68_v2  ;;  %v66_v6 = vld [vmem:[%s295_s3 + $0x28] sm:$0xff] }
   0x4   :  { %53 = vmatpush.msra.mxu0 %v30_v1 }
   0x5   :  { %86 = vmatpush.msra.mxu1 %v67_v4 }
   0x6   :  { %12 = vsyncpa [#allocation3], 0  ;;  %54 = vmatpush.msra.mxu0 %v29_v3  ;;  %v27_v7 = vld [vmem:[%s292_s0] sm:$0xff]  ;;  %vm36_vm0 = vcmask 261120   ;;  %v64_v9 = vld [vmem:[%s295_s3 + $0x18] sm:$0xff]  ;;  %vm73_vm1 = vcmask 523264  }
   0x7   :  { %v65_v8 = vld [vmem:[%s295_s3 + $0x20] sm:$0xff]  ;;  %87 = vmatpush.msra.mxu1 %v66_v6  ;;  %v63_v10 = vld [vmem:[%s295_s3 + $0x10] sm:$0xff]  ;;  %v62_v11 = vld [vmem:[%s295_s3 + $0x8] sm:$0xff]  ;;  %vm108_vm2 = vcmask 392192   ;;  %s182_s18 = smov [#allocation2]  }
   0x8   :  { %55 = vmatpush.msra.mxu0 %v28_v5  ;;  %v61_v12 = vld [vmem:[%s295_s3] sm:$0xff]  ;;  %v103_v13 = vld [vmem:[%s297_s5 + $0x28] sm:$0xff]  ;;  %v101_v15 = vld [vmem:[%s297_s5 + $0x18] sm:$0xff]  ;;  %s138_s19 = sshll.u32 %s182_s18, 4  ;;  %s139_s19 = int_to_ptr.vmem [resolvable:$true] %s138_s19 }
   0x9   :  { %149 = vmatmul.msk.f32.vlgmr.msra.gmra.mxu0 %vm36_vm0, %v27_v7  ;;  %88 = vmatpush.msra.mxu1 %v65_v8  ;;  %v102_v14 = vld [vmem:[%s297_s5 + $0x20] sm:$0xff]  ;;  %v100_v20 = vld [vmem:[%s297_s5 + $0x10] sm:$0xff]  ;;  %v99_v21 = vld [vmem:[%s297_s5 + $0x8] sm:$0xff] }
   0xa   :  { %122 = vmatpush.msra.mxu2 %v103_v13  ;;  %v153_v16 = vld [vmem:[%s294_s2] ss:$0 sm:$0xff] }
   0xb   :  { %89 = vmatpush.msra.mxu1 %v64_v9  ;;  %v98_v22 = vld [vmem:[%s297_s5] sm:$0xff]  ;;  %s140_s5 = sshll.u32 %s299_s7, 4  ;;  %s141_s5 = int_to_ptr.hbm [resolvable:$true] %s140_s5 }
   0xc   :  { %123 = vmatpush.msra.mxu2 %v102_v14  ;;  %v154_v23 = vld [vmem:[%s296_s4] ss:$0 sm:$0xff] }
   0xd   :  { %90 = vmatpush.msra.mxu1 %v63_v10  ;;  %v155_v27 = vld [vmem:[%s298_s6] ss:$0 sm:$0xff] }
   0xe   :  { %124 = vmatpush.msra.mxu2 %v101_v15 }
   0xf   :  { %91 = vmatpush.msra.mxu1 %v62_v11 }
  0x10   :  { %125 = vmatpush.msra.mxu2 %v100_v20 }
  0x11   :  { %92 = vmatpush.msra.mxu1 %v61_v12 }
  0x12   :  { %126 = vmatpush.msra.mxu2 %v99_v21 }
  0x14   :  { %127 = vmatpush.msra.mxu2 %v98_v22 }
  0x86   :  { %v57_v17 = vpop.f32.mrf.mxu0 }
  0x87   :  { %v58_v18 = vadd.f32 %v153_v16, %v57_v17 }
  0x89   :  { %v60_v19 = vmax.f32 %v58_v18, 0.0 }
  0x8b   :  { %150 = vmatmul.msk.f32.vlgmr.msra.gmra.mxu1 %vm73_vm1, %v60_v19 }
 0x108   :  { %v94_v24 = vpop.f32.mrf.mxu1 }
 0x109   :  { %v95_v25 = vadd.f32 %v154_v23, %v94_v24 }
 0x10b   :  { %v97_v26 = vmax.f32 %v95_v25, 0.0 }
 0x10d   :  { %151 = vmatmul.msk.f32.vlgmr.msra.gmra.mxu2 %vm108_vm2, %v97_v26 }
 0x190   :  { %v129_v28 = vpop.f32.mrf.mxu2 }
 0x191   :  { %v130_v29 = vadd.f32 %v155_v27, %v129_v28 }
 0x193   :  { %132 = vst [vmem:[#allocation2] sm:$0xff] %v130_v29 }
 0x194   :  { %143 = dma.vmem_to_hbm [thread:$0]  %s139_s19, 128, %s141_s5, [#allocation3]  }
 0x195   :  { %180 = dma.done.wait [#allocation3], 128  }
 0x196   :  { %181 = vsyncadd [#allocation3], 4294967168 }
 0x197   :  { %148 = vsyncpa [#allocation3], 1 }

</bundles_post_ra>
